<compile_context>
chip_gen: v5e
topology: v5e:2x2
jax: 0.10.0
libtpu: 0.0.40
codegen_flags: <defaults>
</compile_context>

<pallas_src>
import jax
import jax.numpy as jnp
from jax.experimental import pallas as pl
from jax.experimental.pallas import tpu as pltpu


def _swish_kernel(x_ref, o_ref):
    xf = x_ref[...].astype(jnp.float32)
    # sigmoid(x) = 0.5 * tanh(0.5 * x) + 0.5  (tanh -> EUP slot, no VPU divide)
    sig = 0.5 * jnp.tanh(0.5 * xf) + 0.5
    o_ref[...] = (xf * sig).astype(o_ref.dtype)


# ~2 MiB blocks: near HBM roofline on v5e/v6e/v7x, safe under v5e's 16 MiB
# scoped-VMEM default (in + out, double-buffered -> ~8 MiB).
_TARGET_BLOCK_BYTES = 2 * 1024 * 1024


def _swish_2d(x2d: jax.Array, tile_rows: int) -> jax.Array:
    rows, lanes = x2d.shape
    total = rows * lanes
    itemsize = jnp.dtype(x2d.dtype).itemsize
    grid = (pl.cdiv(rows, tile_rows),)
    return pl.pallas_call(
        _swish_kernel,
        out_shape=jax.ShapeDtypeStruct((rows, lanes), x2d.dtype),
        grid_spec=pltpu.PrefetchScalarGridSpec(
            num_scalar_prefetch=0,
            grid=grid,
            in_specs=[pl.BlockSpec((tile_rows, lanes), lambda i: (i, 0))],
            out_specs=pl.BlockSpec((tile_rows, lanes), lambda i: (i, 0)),
        ),
        compiler_params=pltpu.CompilerParams(
            dimension_semantics=("parallel",),
        ),
        cost_estimate=pl.CostEstimate(
            flops=4 * total,
            transcendentals=total,
            bytes_accessed=2 * total * itemsize,
        ),
    )(x2d)


def swish(x: jax.Array) -> jax.Array:
    """Swish / SiLU: x * sigmoid(x), elementwise, any shape / dtype."""
    orig_shape = x.shape
    orig_dtype = x.dtype
    total = x.size
    itemsize = jnp.dtype(orig_dtype).itemsize

    # Pick the widest lane dim (multiple of 128) that divides the element
    # count exactly -> pure reshape, no pad / slice HBM passes.
    lanes = None
    if total % 128 == 0:
        for cand in (1024, 512, 256, 128):
            if total % cand == 0:
                lanes = cand
                break

    if lanes is not None:
        rows = total // lanes
        x2d = x.reshape(rows, lanes)
        trailing = 0
    else:
        # Ragged element count: pad to a multiple of 128 (swish(0) == 0 and
        # the tail is sliced off afterwards).
        lanes = 128
        rows = pl.cdiv(total, lanes)
        trailing = rows * lanes - total
        x2d = jnp.pad(x.reshape(-1), (0, trailing)).reshape(rows, lanes)

    # Tile rows to hit ~2 MiB per block; keep a multiple of 8.  The grid uses
    # cdiv so a ragged last block is fine (no divisibility requirement).
    tr = max(8, (_TARGET_BLOCK_BYTES // (lanes * itemsize)) // 8 * 8)
    if rows < 8:
        tr = rows  # block equals the full (small) array dim -> always valid
    else:
        tr = min(tr, ((rows + 7) // 8) * 8)

    out2d = _swish_2d(x2d, tr)

    if trailing:
        return out2d.reshape(-1)[:total].reshape(orig_shape)
    return out2d.reshape(orig_shape)


if __name__ == "__main__":
    key = jax.random.PRNGKey(0)

    # Shape implied by the module's typical NCHW usage.
    x = jax.random.normal(key, (2, 4, 16, 16), dtype=jnp.float32)
    out = swish(x)
    jax.block_until_ready(out)
    ref = x * jax.nn.sigmoid(x)
    assert out.shape == x.shape and out.dtype == x.dtype
    assert jnp.allclose(out, ref, atol=1e-5, rtol=1e-5)

    # Also exercise the ragged (non-multiple-of-128) padding path.
    x2 = jax.random.normal(jax.random.PRNGKey(1), (3, 5, 7), dtype=jnp.float32)
    out2 = swish(x2)
    jax.block_until_ready(out2)
    ref2 = x2 * jax.nn.sigmoid(x2)
    assert out2.shape == x2.shape and out2.dtype == x2.dtype
    assert jnp.allclose(out2, ref2, atol=1e-5, rtol=1e-5)

    print("KERNEL_OK")
</pallas_src>

<mosaic_0001>
module attributes {stable_mosaic.version = 11 : i64} {
  func.func @_swish_kernel(%arg0: i32, %arg1: memref<2x1024xf32, #tpu.memory_space<vmem>>, %arg2: memref<2x1024xf32, #tpu.memory_space<vmem>>) attributes {dimension_semantics = [#tpu.dimension_semantics<parallel>], iteration_bounds = array<i64: 1>, scalar_prefetch = 0 : i64, scratch_operands = 0 : i64, tpu.core_type = #tpu.core_type<tc>, window_params = [{transform_indices = @transform_0, window_bounds = array<i64: 2, 1024>}, {transform_indices = @transform_1, window_bounds = array<i64: 2, 1024>}]} {
    %c0 = arith.constant 0 : index
    %c0_0 = arith.constant 0 : index
    %0 = vector.load %arg1[%c0, %c0_0] : memref<2x1024xf32, #tpu.memory_space<vmem>>, vector<2x1024xf32>
    %cst = arith.constant 5.000000e-01 : f32
    %1 = vector.broadcast %cst : f32 to vector<2x1024xf32>
    %2 = arith.mulf %1, %0 : vector<2x1024xf32>
    %3 = math.tanh %2 : vector<2x1024xf32>
    %cst_1 = arith.constant 5.000000e-01 : f32
    %4 = vector.broadcast %cst_1 : f32 to vector<2x1024xf32>
    %5 = arith.mulf %4, %3 : vector<2x1024xf32>
    %cst_2 = arith.constant 5.000000e-01 : f32
    %6 = vector.broadcast %cst_2 : f32 to vector<2x1024xf32>
    %7 = arith.addf %5, %6 : vector<2x1024xf32>
    %8 = arith.mulf %0, %7 : vector<2x1024xf32>
    %c0_3 = arith.constant 0 : index
    %c0_4 = arith.constant 0 : index
    %9 = vector.load %arg2[%c0_3, %c0_4] : memref<2x1024xf32, #tpu.memory_space<vmem>>, vector<2x1024xf32>
    tpu.vector_store %arg2[%c0_3, %c0_4], %8 {strides = array<i32>} : memref<2x1024xf32, #tpu.memory_space<vmem>>, vector<2x1024xf32>,
    return
  }
  func.func @transform_0(%arg0: i32) -> (i32, i32) {
    %c0_i32 = arith.constant 0 : i32
    %c0_i32_0 = arith.constant 0 : i32
    return %arg0, %c0_i32 : i32, i32
  }
  func.func @transform_1(%arg0: i32) -> (i32, i32) {
    %c0_i32 = arith.constant 0 : i32
    %c0_i32_0 = arith.constant 0 : i32
    return %arg0, %c0_i32 : i32, i32
  }
}

</mosaic_0001>

<bundles_post_ra>
// kernel: tpu_custom_call.1
= control target key start
LH: loop header
LB: loop body
LE: loop exit
PB: predicated region body
PF: predicated region fallthrough
CT: control target
= control target key end

     0   :  { %6 = vsyncpa [#allocation3], 0  ;;  %s130_s0 = inlined_call_operand.hbm [shape: f32[2,1024], index: 0, kind: input, shape index: {}]   ;;  %s131_s1 = inlined_call_operand.hbm [shape: f32[2,1024], index: 1, kind: output, shape index: {}]  }
   0x1   :  { %7 = vsyncpa [#allocation4], 0  ;;  %s13_s8 = sshll.u32 %s130_s0, 4  ;;  %s112_s9 = smov [#allocation2]   ;;  %s14_s8 = int_to_ptr.hbm [resolvable:$true] %s13_s8 }
   0x2   :  { %s15_s10 = sshll.u32 %s112_s9, 4  ;;  %s16_s10 = int_to_ptr.vmem [resolvable:$true] %s15_s10 }
   0x3   :  { %18 = dma.hbm_to_vmem [thread:$0]  %s14_s8, 256, %s16_s10, [#allocation3]  }
   0x4   :  { %108 = dma.done.wait [#allocation3], 256  }
   0x5   :  { %109 = vsyncadd [#allocation3], 4294967040  ;;  %v23_v0 = vld [vmem:[#allocation2] sm:$0xff]  ;;  %v24_v1 = vld [vmem:[#allocation2 + $0x8] sm:$0xff]  ;;  %s113_s11 = smov [#allocation5]   ;;  %s44_s14 = sshll.u32 %s131_s1, 4  ;;  %s45_s14 = int_to_ptr.hbm [resolvable:$true] %s44_s14 }
   0x6   :  { %v25_v2 = vmul.f32 0.5, %v23_v0  ;;  %v26_v3 = vmul.f32 0.5, %v24_v1  ;;  %s42_s0 = sshll.u32 %s113_s11, 4  ;;  %s43_s0 = int_to_ptr.vmem [resolvable:$true] %s42_s0 }
   0x8   :  { %56 = vtanh.f32 %v25_v2 }
   0x9   :  { %58 = vtanh.f32 %v26_v3 }
   0xe   :  { %v57_v4 = vpop.eup %56 }
   0xf   :  { %v59_v5 = vpop.eup %58  ;;  %v29_v6 = vmul.f32 0.5, %v57_v4 }
  0x10   :  { %v30_v7 = vmul.f32 0.5, %v59_v5 }
  0x11   :  { %v31_v8 = vadd.f32 0.5, %v29_v6 }
  0x12   :  { %v32_v9 = vadd.f32 0.5, %v30_v7 }
  0x13   :  { %v33_v10 = vmul.f32 %v31_v8, %v23_v0 }
  0x14   :  { %v34_v11 = vmul.f32 %v32_v9, %v24_v1 }
  0x15   :  { %35 = vst [vmem:[#allocation5] sm:$0xff] %v33_v10 }
  0x16   :  { %36 = vst [vmem:[#allocation5 + $0x8] sm:$0xff] %v34_v11 }
  0x17   :  { %47 = dma.vmem_to_hbm [thread:$0]  %s43_s0, 256, %s45_s14, [#allocation4]  }
  0x18   :  { %110 = dma.done.wait [#allocation4], 256  }
  0x19   :  { %111 = vsyncadd [#allocation4], 4294967040 }
  0x1a   :  { %52 = vsyncpa [#allocation3], 1 }
  0x1b   :  { %53 = vsyncpa [#allocation4], 1 }

</bundles_post_ra>
